<compile_context>
chip_gen: v7x
topology: tpu7x:2x2x1
jax: 0.10.0
libtpu: 0.0.40
codegen_flags: <defaults>
</compile_context>

<pallas_src>
import jax
import jax.numpy as jnp
from jax.experimental import pallas as pl
from jax.experimental.pallas import tpu as pltpu


def _mlp_kernel(x_ref, w1_ref, b1_ref, w2_ref, b2_ref, w3_ref, b3_ref, o_ref):
    # x_ref: (2, TB) bf16, batch on lanes.  Weights are PyTorch-native
    # (out_features, in_features) in bf16; biases are (out_features, 1) f32.
    # All matmuls go to the MXU with f32 accumulation.
    x = x_ref[...]                                               # (2, TB) bf16

    # Layer 1: Linear(2 -> 16) + ReLU.
    h1 = jnp.dot(w1_ref[...], x, preferred_element_type=jnp.float32)
    h1 = jnp.maximum(h1 + b1_ref[...], 0.0)                      # (16, TB) f32

    # Layer 2: Linear(16 -> 8) + ReLU.
    h2 = jnp.dot(w2_ref[...], h1.astype(jnp.bfloat16),
                 preferred_element_type=jnp.float32)
    h2 = jnp.maximum(h2 + b2_ref[...], 0.0)                      # (8, TB) f32

    # Layer 3: Linear(8 -> 1) + Sigmoid (exact: EUP exp + one f32 divide).
    z = jnp.dot(w3_ref[...], h2.astype(jnp.bfloat16),
                preferred_element_type=jnp.float32)
    z = z + b3_ref[...]                                          # (1, TB) f32
    o_ref[...] = 1.0 / (1.0 + jnp.exp(-z))


def meta_learner_forward_lane_major(x_t, params, *, block_b=8192):
    """Lane-major entry point.

    x_t: (2, N) bf16 with N a multiple of 128 (batch on the lane axis).
    Returns (1, N) float32.  Call this directly when the upstream producer
    can emit the lane-major bf16 layout, avoiding the wrapper layout pass.
    """
    n = x_t.shape[1]
    assert n % 128 == 0, n

    # Lane-dense batch tile: multiple of 128, capped at block_b.  When the
    # batch spans >1 lane unit, cap the tile so grid >= 2 (keeps both v7x
    # TensorCores busy; harmless on v5e/v6e).
    units = n // 128
    tb_units = max(1, min(block_b // 128, units))
    if units > 1:
        tb_units = min(tb_units, pl.cdiv(units, 2))
    tb = tb_units * 128
    grid = pl.cdiv(units, tb_units)

    w1 = params["w1"].astype(jnp.bfloat16)
    w2 = params["w2"].astype(jnp.bfloat16)
    w3 = params["w3"].astype(jnp.bfloat16)
    b1, b2, b3 = params["b1"], params["b2"], params["b3"]

    # Constant index_map -> weights/biases DMA'd once, stay resident in VMEM.
    const = lambda a: pl.BlockSpec(a.shape, lambda i: (0,) * a.ndim)

    return pl.pallas_call(
        _mlp_kernel,
        out_shape=jax.ShapeDtypeStruct((1, n), jnp.float32),
        grid=(grid,),
        in_specs=[
            pl.BlockSpec((2, tb), lambda i: (0, i)),     # x tile, batch on lanes
            const(w1), const(b1),
            const(w2), const(b2),
            const(w3), const(b3),
        ],
        out_specs=pl.BlockSpec((1, tb), lambda i: (0, i)),   # lane-dense output
        compiler_params=pltpu.CompilerParams(
            dimension_semantics=("parallel",),
        ),
    )(x_t, w1, b1, w2, b2, w3, b3)


def meta_learner_forward(x, params, *, block_b=8192):
    """x: (B, 2) float32 -> (B, 1) float32 (matches MetaLearner.forward)."""
    B = x.shape[0]
    b_pad = pl.cdiv(B, 128) * 128

    # Layout prep: a single fused pad + transpose + bf16 cast when jitted.
    # Ideally the upstream op produces the (2, N) bf16 layout directly and
    # calls meta_learner_forward_lane_major, removing this HBM pass.
    x_t = jnp.pad(x, ((0, b_pad - B), (0, 0))).T.astype(jnp.bfloat16)

    out_t = meta_learner_forward_lane_major(x_t, params, block_b=block_b)
    return out_t[:, :B].T                                     # (B, 1) float32


def init_params(key):
    """PyTorch nn.Linear default init: U(-1/sqrt(fan_in), +1/sqrt(fan_in)).

    Weights are stored PyTorch-native (out_features, in_features) in f32;
    biases as (out_features, 1) so they broadcast over the lane (batch) axis.
    """
    dims = [(2, 16), (16, 8), (8, 1)]
    params = {}
    for i, (fan_in, fan_out) in enumerate(dims, start=1):
        key, kw, kb = jax.random.split(key, 3)
        bound = 1.0 / jnp.sqrt(float(fan_in))
        params[f"w{i}"] = jax.random.uniform(
            kw, (fan_out, fan_in), jnp.float32, minval=-bound, maxval=bound)
        params[f"b{i}"] = jax.random.uniform(
            kb, (fan_out, 1), jnp.float32, minval=-bound, maxval=bound)
    return params


def _reference_forward(x, params):
    # Pure-JAX f32 reference matching PyTorch semantics: y = x @ W.T + b.
    h1 = jnp.maximum(x @ params["w1"].T + params["b1"].T, 0.0)
    h2 = jnp.maximum(h1 @ params["w2"].T + params["b2"].T, 0.0)
    z = h2 @ params["w3"].T + params["b3"].T
    return jax.nn.sigmoid(z)


if __name__ == "__main__":
    key = jax.random.PRNGKey(0)
    key, kx = jax.random.split(key)

    B = 16
    x = jax.random.normal(kx, (B, 2), dtype=jnp.float32)
    params = init_params(key)

    fwd = jax.jit(meta_learner_forward)
    out = jax.block_until_ready(fwd(x, params))

    ref = _reference_forward(x, params)
    assert out.shape == (B, 1), out.shape
    # Tolerance accounts for bf16 MXU inputs (f32 accumulation).
    assert jnp.allclose(out, ref, atol=2e-2, rtol=2e-2), (out, ref)

    print("KERNEL_OK")
</pallas_src>

<mosaic_0001>
module attributes {stable_mosaic.version = 11 : i64} {
  func.func @_mlp_kernel(%arg0: i32, %arg1: memref<2x128xbf16, #tpu.memory_space<vmem>>, %arg2: memref<16x2xbf16, #tpu.memory_space<vmem>>, %arg3: memref<16x1xf32, #tpu.memory_space<vmem>>, %arg4: memref<8x16xbf16, #tpu.memory_space<vmem>>, %arg5: memref<8x1xf32, #tpu.memory_space<vmem>>, %arg6: memref<1x8xbf16, #tpu.memory_space<vmem>>, %arg7: memref<1x1xf32, #tpu.memory_space<vmem>>, %arg8: memref<1x128xf32, #tpu.memory_space<vmem>>) attributes {dimension_semantics = [#tpu.dimension_semantics<parallel>], iteration_bounds = array<i64: 1>, scalar_prefetch = 0 : i64, scratch_operands = 0 : i64, tpu.core_type = #tpu.core_type<tc>, window_params = [{transform_indices = @transform_0, window_bounds = array<i64: 2, 128>}, {pipeline_mode = #tpu.pipeline_mode<synchronous>, transform_indices = @transform_1, window_bounds = array<i64: 16, 2>}, {pipeline_mode = #tpu.pipeline_mode<synchronous>, transform_indices = @transform_2, window_bounds = array<i64: 16, 1>}, {pipeline_mode = #tpu.pipeline_mode<synchronous>, transform_indices = @transform_3, window_bounds = array<i64: 8, 16>}, {pipeline_mode = #tpu.pipeline_mode<synchronous>, transform_indices = @transform_4, window_bounds = array<i64: 8, 1>}, {pipeline_mode = #tpu.pipeline_mode<synchronous>, transform_indices = @transform_5, window_bounds = array<i64: 1, 8>}, {pipeline_mode = #tpu.pipeline_mode<synchronous>, transform_indices = @transform_6, window_bounds = array<i64: 1, 1>}, {transform_indices = @transform_7, window_bounds = array<i64: 1, 128>}]} {
    %c0 = arith.constant 0 : index
    %c0_0 = arith.constant 0 : index
    %0 = vector.load %arg1[%c0, %c0_0] : memref<2x128xbf16, #tpu.memory_space<vmem>>, vector<2x128xbf16>
    %c0_1 = arith.constant 0 : index
    %c0_2 = arith.constant 0 : index
    %1 = vector.load %arg2[%c0_1, %c0_2] : memref<16x2xbf16, #tpu.memory_space<vmem>>, vector<16x2xbf16>
    %cst = arith.constant dense<0.000000e+00> : vector<16x128xf32>
    %2 = tpu.matmul %1, %0, %cst {dimension_numbers = #tpu.dot_dimension_numbers<[1], [0], [0], [1], [0, 0, 1, 1], [], []>} : vector<16x2xbf16>, vector<2x128xbf16>, vector<16x128xf32> -> vector<16x128xf32>
    %c0_3 = arith.constant 0 : index
    %c0_4 = arith.constant 0 : index
    %3 = vector.load %arg3[%c0_3, %c0_4] : memref<16x1xf32, #tpu.memory_space<vmem>>, vector<16x1xf32>
    %4 = vector.broadcast %3 : vector<16x1xf32> to vector<16x128xf32>
    %5 = arith.addf %2, %4 : vector<16x128xf32>
    %cst_5 = arith.constant 0.000000e+00 : f32
    %6 = vector.broadcast %cst_5 : f32 to vector<16x128xf32>
    %7 = arith.maximumf %5, %6 : vector<16x128xf32>
    %c0_6 = arith.constant 0 : index
    %c0_7 = arith.constant 0 : index
    %8 = vector.load %arg4[%c0_6, %c0_7] : memref<8x16xbf16, #tpu.memory_space<vmem>>, vector<8x16xbf16>
    %9 = arith.truncf %7 : vector<16x128xf32> to vector<16x128xbf16>
    %cst_8 = arith.constant dense<0.000000e+00> : vector<8x128xf32>
    %10 = tpu.matmul %8, %9, %cst_8 {dimension_numbers = #tpu.dot_dimension_numbers<[1], [0], [0], [1], [0, 0, 1, 1], [], []>} : vector<8x16xbf16>, vector<16x128xbf16>, vector<8x128xf32> -> vector<8x128xf32>
    %c0_9 = arith.constant 0 : index
    %c0_10 = arith.constant 0 : index
    %11 = vector.load %arg5[%c0_9, %c0_10] : memref<8x1xf32, #tpu.memory_space<vmem>>, vector<8x1xf32>
    %12 = vector.broadcast %11 : vector<8x1xf32> to vector<8x128xf32>
    %13 = arith.addf %10, %12 : vector<8x128xf32>
    %cst_11 = arith.constant 0.000000e+00 : f32
    %14 = vector.broadcast %cst_11 : f32 to vector<8x128xf32>
    %15 = arith.maximumf %13, %14 : vector<8x128xf32>
    %c0_12 = arith.constant 0 : index
    %c0_13 = arith.constant 0 : index
    %16 = vector.load %arg6[%c0_12, %c0_13] : memref<1x8xbf16, #tpu.memory_space<vmem>>, vector<1x8xbf16>
    %17 = arith.truncf %15 : vector<8x128xf32> to vector<8x128xbf16>
    %cst_14 = arith.constant dense<0.000000e+00> : vector<1x128xf32>
    %18 = tpu.matmul %16, %17, %cst_14 {dimension_numbers = #tpu.dot_dimension_numbers<[1], [0], [0], [1], [0, 0, 1, 1], [], []>} : vector<1x8xbf16>, vector<8x128xbf16>, vector<1x128xf32> -> vector<1x128xf32>
    %c0_15 = arith.constant 0 : index
    %c0_16 = arith.constant 0 : index
    %19 = vector.load %arg7[%c0_15, %c0_16] : memref<1x1xf32, #tpu.memory_space<vmem>>, vector<1x1xf32>
    %20 = vector.broadcast %19 : vector<1x1xf32> to vector<1x128xf32>
    %21 = arith.addf %18, %20 : vector<1x128xf32>
    %cst_17 = arith.constant 0.000000e+00 : f32
    %22 = vector.broadcast %cst_17 : f32 to vector<1x128xf32>
    %23 = arith.subf %22, %21 : vector<1x128xf32>
    %24 = math.exp %23 : vector<1x128xf32>
    %cst_18 = arith.constant 1.000000e+00 : f32
    %25 = vector.broadcast %cst_18 : f32 to vector<1x128xf32>
    %26 = arith.addf %25, %24 : vector<1x128xf32>
    %cst_19 = arith.constant 1.000000e+00 : f32
    %27 = vector.broadcast %cst_19 : f32 to vector<1x128xf32>
    %28 = arith.divf %27, %26 : vector<1x128xf32>
    %c0_20 = arith.constant 0 : index
    %c0_21 = arith.constant 0 : index
    %29 = vector.load %arg8[%c0_20, %c0_21] : memref<1x128xf32, #tpu.memory_space<vmem>>, vector<1x128xf32>
    tpu.vector_store %arg8[%c0_20, %c0_21], %28 {strides = array<i32>} : memref<1x128xf32, #tpu.memory_space<vmem>>, vector<1x128xf32>,
    return
  }
  func.func @transform_0(%arg0: i32) -> (i32, i32) {
    %c0_i32 = arith.constant 0 : i32
    %c0_i32_0 = arith.constant 0 : i32
    return %c0_i32, %arg0 : i32, i32
  }
  func.func @transform_1(%arg0: i32) -> (i32, i32) {
    %c0_i32 = arith.constant 0 : i32
    %c0_i32_0 = arith.constant 0 : i32
    %c0_i32_1 = arith.constant 0 : i32
    return %c0_i32, %c0_i32_0 : i32, i32
  }
  func.func @transform_2(%arg0: i32) -> (i32, i32) {
    %c0_i32 = arith.constant 0 : i32
    %c0_i32_0 = arith.constant 0 : i32
    %c0_i32_1 = arith.constant 0 : i32
    return %c0_i32, %c0_i32_0 : i32, i32
  }
  func.func @transform_3(%arg0: i32) -> (i32, i32) {
    %c0_i32 = arith.constant 0 : i32
    %c0_i32_0 = arith.constant 0 : i32
    %c0_i32_1 = arith.constant 0 : i32
    return %c0_i32, %c0_i32_0 : i32, i32
  }
  func.func @transform_4(%arg0: i32) -> (i32, i32) {
    %c0_i32 = arith.constant 0 : i32
    %c0_i32_0 = arith.constant 0 : i32
    %c0_i32_1 = arith.constant 0 : i32
    return %c0_i32, %c0_i32_0 : i32, i32
  }
  func.func @transform_5(%arg0: i32) -> (i32, i32) {
    %c0_i32 = arith.constant 0 : i32
    %c0_i32_0 = arith.constant 0 : i32
    %c0_i32_1 = arith.constant 0 : i32
    return %c0_i32, %c0_i32_0 : i32, i32
  }
  func.func @transform_6(%arg0: i32) -> (i32, i32) {
    %c0_i32 = arith.constant 0 : i32
    %c0_i32_0 = arith.constant 0 : i32
    %c0_i32_1 = arith.constant 0 : i32
    return %c0_i32, %c0_i32_0 : i32, i32
  }
  func.func @transform_7(%arg0: i32) -> (i32, i32) {
    %c0_i32 = arith.constant 0 : i32
    %c0_i32_0 = arith.constant 0 : i32
    return %c0_i32, %arg0 : i32, i32
  }
}

</mosaic_0001>

<bundles_post_ra>
// kernel: meta_learner_forward.1
= control target key start
LH: loop header
LB: loop body
LE: loop exit
PB: predicated region body
PF: predicated region fallthrough
CT: control target
= control target key end

     0   :  { %vm53_vm0 = vcmask 1040384   ;;  %v262_v0 = vmov 0.0   ;;  %vm263_vm1 = vmmov 0   ;;  %vm49_vm2 = vcmask 15360   ;;  %s335_s0 = inlined_call_operand.vmem [shape: bf16[2,128], index: 0, kind: input, shape index: {}]   ;;  %s336_s1 = inlined_call_operand.vmem [shape: bf16[16,2], index: 1, kind: input, shape index: {}]   ;;  %s337_s2 = inlined_call_operand.vmem [shape: f32[16,1], index: 2, kind: input, shape index: {}]   ;;  %s338_s4 = inlined_call_operand.vmem [shape: f32[8,1], index: 4, kind: input, shape index: {}]   ;;  %s339_s6 = inlined_call_operand.<no memory space> [shape: f32[1,1], index: 6, kind: input, shape index: {}]   ;;  %s340_s3 = inlined_call_operand.vmem [shape: bf16[8,16], index: 3, kind: input, shape index: {}]   ;;  %s341_s5 = inlined_call_operand.vmem [shape: bf16[1,8], index: 5, kind: input, shape index: {}]   ;;  %s342_s7 = inlined_call_operand.vmem [shape: f32[1,128], index: 7, kind: output, shape index: {}]  }
   0x1   :  { %234 = vmatprep.subr.bf16.mxu0 %v262_v0  ;;  %v29_v1 = vld [vmem:[%s335_s0] sm:$0x1]  ;;  %236 = vmatprep.mubr.msk.bf16.mxu0 %vm263_vm1, %v262_v0  ;;  %v264_v5 = vmov 0   ;;  %v33_v6 = vld [vmem:[%s337_s2 + $0x8] sm:$0xff]  ;;  %v12_v8 = vstv %s339_s6  ;;  %vm108_vm3 = vcmask 130048   ;;  %vm169_vm4 = vcmask 1043456  }
   0x2   :  { %v55_v2 = vsel %vm53_vm0, %v29_v1, 0  ;;  %v257_v3 = vld [vmem:[%s336_s1] sm:$0xff]   ;;  %240 = vmatprep.subr.bf16.mxu1 %v262_v0  ;;  %242 = vmatprep.mubr.msk.bf16.mxu1 %vm263_vm1, %v262_v0  ;;  %13 = vst [vmem:[#allocation2] sm:$0x1] %v12_v8  ;;  %vm165_vm5 = vcmask 64512   ;;  %v161_v32 = vlaneseq }
   0x3   :  { %v32_v4 = vld [vmem:[%s337_s2] sm:$0xff]  ;;  %235 = vmatpush3.bf16.msra.mxu0 %v55_v2  ;;  %255 = vset.pattern.permute.xlu0 %v264_v5 }
   0x4   :  { %36 = vperm.xlu0 %255, %v32_v4   ;;  %256 = vset.pattern.permute.xlu1 %v264_v5  ;;  %v102_v7 = vld [vmem:[%s338_s4] sm:$0xff]  ;;  %v162_v33 = vshrl.u32 %v161_v32, 7 }
   0x5   :  { %246 = vmatprep.subr.bf16.mxu0 %v262_v0  ;;  %105 = vperm.xlu1 %256, %v102_v7   ;;  %v100_v21 = vld [vmem:[%s340_s3] sm:$0xf] }
   0x6   :  { %237 = vmatmul.mubr.msk.bf16.vlgmr.msra.gmra.mrb[0].mxu0 %vm49_vm2, %v257_v3  ;;  %v153_v31 = vld [vmem:[%s341_s5] sm:$0x1]  ;;  %v163_v34 = vsub.s32 0, %v162_v33 }
   0x7   :  { %248 = vmatprep.mubr.msk.bf16.mxu0 %vm263_vm1, %v262_v0 }
   0x8   :  { %41 = vperm.xlu0 %255, %v33_v6  }
   0x9   :  { %v155_v9 = vld [vmem:[#allocation2] sm:$0x1] }
   0xa   :  { %158 = vperm.xlu1 %256, %v155_v9  }
  0x83   :  { %v37_v10 = vpop.permute.xlu0 %36 }
  0x84   :  { %v106_v22 = vpop.permute.xlu1 %105 }
  0x87   :  { %v42_v14 = vpop.permute.xlu0 %41 }
  0x89   :  { %v159_v35 = vpop.permute.xlu1 %158 }
  0x8a   :  { %v164_v36 = vrot.slane %v159_v35, %v163_v34 }
  0xd9   :  { %v91_v11 = vpop.f32.mrb[0].mxu0 }
  0xda   :  { %v92_v12 = vadd.f32 %v91_v11, %v37_v10  ;;  %v238_v13 = vpop.f32.mrb[1].mxu0 }
  0xdb   :  { %v94_v15 = vpop.f32.mrb[2].mxu0 }
  0xdc   :  { %v95_v16 = vadd.f32 %v94_v15, %v42_v14  ;;  %v239_v17 = vpop.f32.mrb[3].mxu0  ;;  %v98_v18 = vmax.f32 %v92_v12, 0.0 }
  0xde   :  { %v99_v19 = vmax.f32 %v95_v16, 0.0 }
  0xe0   :  { %v101_v20 = vpack.c.bf16 %v99_v19, %v98_v18 }
  0xe2   :  { %241 = vmatpush3.bf16.msra.mxu1 %v101_v20 }
  0xe5   :  { %243 = vmatmul.mubr.msk.bf16.vlgmr.msra.gmra.mrb[0].mxu1 %vm108_vm3, %v100_v21 }
 0x1b8   :  { %v146_v23 = vpop.f32.mrb[0].mxu1 }
 0x1b9   :  { %v147_v24 = vadd.f32 %v146_v23, %v106_v22  ;;  %v244_v25 = vpop.f32.mrb[1].mxu1 }
 0x1ba   :  { %v149_v26 = vpop.f32.mrb[2].mxu1 }
 0x1bb   :  { %v152_v27 = vmax.f32 %v147_v24, 0.0  ;;  %v245_v28 = vpop.f32.mrb[3].mxu1 }
 0x1bd   :  { %v154_v29 = vpack.c.bf16 %v152_v27, %v152_v27 }
 0x1bf   :  { %v171_v30 = vsel %vm169_vm4, %v154_v29, 0 }
 0x1c0   :  { %247 = vmatpush3.bf16.msra.mxu0 %v171_v30 }
 0x1c3   :  { %249 = vmatmul.mubr.msk.bf16.vlgmr.msra.gmra.mrb[4].mxu0 %vm165_vm5, %v153_v31 }
 0x296   :  { %v207_v37 = vpop.f32.mrb[4].mxu0 }
 0x297   :  { %v208_v38 = vadd.f32 %v207_v37, %v164_v36  ;;  %v250_v39 = vpop.f32.mrb[5].mxu0 }
 0x298   :  { %v210_v40 = vpop.f32.mrb[6].mxu0 }
 0x299   :  { %v213_v41 = vsub.f32 0.0, %v208_v38  ;;  %v251_v42 = vpop.f32.mrb[7].mxu0 }
 0x29b   :  { %v214_v43 = vmul.f32 1.442695, %v213_v41 }
 0x29d   :  { %258 = vpow2.f32 %v214_v43 }
 0x2a7   :  { %v259_v44 = vpop.eup %258 }
 0x2a8   :  { %v216_v45 = vadd.f32 1.0, %v259_v44 }
 0x2aa   :  { %260 = vrcp.f32 %v216_v45 }
 0x2b4   :  { %v261_v46 = vpop.eup %260 }
 0x2b5   :  { %219 = vst [vmem:[%s342_s7] sm:$0x1] %v261_v46 }

</bundles_post_ra>
